<compile_context>
chip_gen: v7x
topology: tpu7x:2x2x1
jax: 0.10.0
libtpu: 0.0.40
codegen_flags: <defaults>
</compile_context>

<pallas_src>
import jax
import jax.numpy as jnp
from jax.experimental import pallas as pl
from jax.experimental.pallas import tpu as pltpu

LANE = 128  # lane width: pad the output feature dim to a multiple of this


def branch_kernel(x_ref, w_ref, b_ref, o_ref):
    # Single fused GEMM + bias: [B, F] @ [F, N_pad] + [1, N_pad]
    o_ref[...] = (
        jnp.dot(x_ref[...], w_ref[...], preferred_element_type=jnp.float32)
        + b_ref[...]
    ).astype(o_ref.dtype)


def _fold_params(params, eps=1e-5):
    """Fold dense1 + eval-BatchNorm + dense2 into one (W_eff, b_eff)."""
    scale = params["gamma"] * jax.lax.rsqrt(params["running_var"] + eps)        # [1, H]
    w1_fold = params["w1t"] * scale                                             # [F, H]
    b1_fold = (params["b1"] - params["running_mean"]) * scale + params["beta"]  # [1, H]
    w_eff = w1_fold @ params["w2t"]                                             # [F, O]
    b_eff = b1_fold @ params["w2t"] + params["b2"]                              # [1, O]
    return w_eff, b_eff


def branch_forward(x, params):
    """x: [B, input_size] float32. params: dict from init_params. Returns [B, num_outputs]."""
    B, F = x.shape
    num_outputs = params["w2t"].shape[1]

    # Algebraic folding happens in the wrapper (plain XLA ops); the kernel sees 3 operands.
    w_eff, b_eff = _fold_params(params)

    # Lane-dense output: pad the output feature dim up to a multiple of 128.
    n_pad = pl.cdiv(num_outputs, LANE) * LANE
    pad = n_pad - num_outputs
    w_p = jnp.pad(w_eff, ((0, 0), (0, pad)))
    b_p = jnp.pad(b_eff, ((0, 0), (0, pad)))

    # Tiny problem (few KiB): everything fits in VMEM as full-array blocks, no grid needed.
    # Full-array, whole-ref BlockSpecs (memory_space only) avoid the late-binding lambda trap.
    out_padded = pl.pallas_call(
        branch_kernel,
        grid=(),
        in_specs=[
            pl.BlockSpec(memory_space=pltpu.MemorySpace.VMEM),  # x
            pl.BlockSpec(memory_space=pltpu.MemorySpace.VMEM),  # W_eff (padded)
            pl.BlockSpec(memory_space=pltpu.MemorySpace.VMEM),  # b_eff (padded)
        ],
        out_specs=pl.BlockSpec(memory_space=pltpu.MemorySpace.VMEM),
        out_shape=jax.ShapeDtypeStruct((B, n_pad), jnp.float32),
        cost_estimate=pl.CostEstimate(
            flops=2 * B * F * n_pad,
            transcendentals=0,
            bytes_accessed=4 * (B * F + F * n_pad + n_pad + B * n_pad),
        ),
    )(x, w_p, b_p)

    return out_padded[:, :num_outputs]


def init_params(key, input_size, hidden_size, num_outputs):
    """Deterministic, PyTorch-style (uniform +-1/sqrt(fan_in)) initialization."""
    k1, k2, k3, k4, k5, k6, k7, k8 = jax.random.split(key, 8)
    lim1 = 1.0 / jnp.sqrt(input_size)
    lim2 = 1.0 / jnp.sqrt(hidden_size)
    w1 = jax.random.uniform(k1, (hidden_size, input_size), jnp.float32, -lim1, lim1)
    b1 = jax.random.uniform(k2, (hidden_size,), jnp.float32, -lim1, lim1)
    w2 = jax.random.uniform(k3, (num_outputs, hidden_size), jnp.float32, -lim2, lim2)
    b2 = jax.random.uniform(k4, (num_outputs,), jnp.float32, -lim2, lim2)
    gamma = 1.0 + 0.1 * jax.random.normal(k5, (hidden_size,), jnp.float32)
    beta = 0.1 * jax.random.normal(k6, (hidden_size,), jnp.float32)
    running_mean = 0.1 * jax.random.normal(k7, (hidden_size,), jnp.float32)
    running_var = 1.0 + 0.1 * jax.random.uniform(k8, (hidden_size,), jnp.float32)
    return {
        "w1t": w1.T,                                   # [input_size, hidden_size]
        "b1": b1.reshape(1, hidden_size),
        "gamma": gamma.reshape(1, hidden_size),
        "beta": beta.reshape(1, hidden_size),
        "running_mean": running_mean.reshape(1, hidden_size),
        "running_var": running_var.reshape(1, hidden_size),
        "w2t": w2.T,                                   # [hidden_size, num_outputs]
        "b2": b2.reshape(1, num_outputs),
    }


def branch_reference(x, p):
    """Unfused eval-mode reference: Linear -> BatchNorm (running stats) -> Dropout(id) -> Linear."""
    h = x @ p["w1t"] + p["b1"]
    bn = (h - p["running_mean"]) * p["gamma"] / jnp.sqrt(p["running_var"] + 1e-5) + p["beta"]
    return bn @ p["w2t"] + p["b2"]


if __name__ == "__main__":
    B, input_size, hidden_size, num_outputs = 8, 32, 64, 16

    key = jax.random.PRNGKey(0)
    kx, kp = jax.random.split(key)
    x = jax.random.normal(kx, (B, input_size), jnp.float32)
    params = init_params(kp, input_size, hidden_size, num_outputs)

    out = jax.jit(branch_forward)(x, params)
    out = jax.block_until_ready(out)

    ref = branch_reference(x, params)
    assert out.shape == (B, num_outputs)
    assert jnp.allclose(out, ref, atol=1e-5, rtol=1e-5), "mismatch vs reference"

    print("KERNEL_OK")
</pallas_src>

<mosaic_0001>
module attributes {stable_mosaic.version = 11 : i64} {
  func.func @branch_kernel(%arg0: memref<8x32xf32, #tpu.memory_space<vmem>>, %arg1: memref<32x128xf32, #tpu.memory_space<vmem>>, %arg2: memref<1x128xf32, #tpu.memory_space<vmem>>, %arg3: memref<8x128xf32, #tpu.memory_space<vmem>>) attributes {dimension_semantics = [], scalar_prefetch = 0 : i64, scratch_operands = 0 : i64, tpu.core_type = #tpu.core_type<tc>} {
    %c0 = arith.constant 0 : index
    %c0_0 = arith.constant 0 : index
    %0 = vector.load %arg0[%c0, %c0_0] : memref<8x32xf32, #tpu.memory_space<vmem>>, vector<8x32xf32>
    %c0_1 = arith.constant 0 : index
    %c0_2 = arith.constant 0 : index
    %1 = vector.load %arg1[%c0_1, %c0_2] : memref<32x128xf32, #tpu.memory_space<vmem>>, vector<32x128xf32>
    %cst = arith.constant dense<0.000000e+00> : vector<8x128xf32>
    %2 = tpu.matmul %0, %1, %cst {dimension_numbers = #tpu.dot_dimension_numbers<[1], [0], [0], [1], [0, 0, 1, 1], [], []>} : vector<8x32xf32>, vector<32x128xf32>, vector<8x128xf32> -> vector<8x128xf32>
    %c0_3 = arith.constant 0 : index
    %c0_4 = arith.constant 0 : index
    %3 = vector.load %arg2[%c0_3, %c0_4] : memref<1x128xf32, #tpu.memory_space<vmem>>, vector<1x128xf32>
    %4 = vector.broadcast %3 : vector<1x128xf32> to vector<8x128xf32>
    %5 = arith.addf %2, %4 : vector<8x128xf32>
    %c0_5 = arith.constant 0 : index
    %c0_6 = arith.constant 0 : index
    %6 = vector.load %arg3[%c0_5, %c0_6] : memref<8x128xf32, #tpu.memory_space<vmem>>, vector<8x128xf32>
    tpu.vector_store %arg3[%c0_5, %c0_6], %5 {strides = array<i32>} : memref<8x128xf32, #tpu.memory_space<vmem>>, vector<8x128xf32>,
    return
  }
}

</mosaic_0001>

<bundles_post_ra>
// kernel: branch_forward.1
= control target key start
LH: loop header
LB: loop body
LE: loop exit
PB: predicated region body
PF: predicated region fallthrough
CT: control target
= control target key end

     0   :  { %v168_v3 = vmov 0.0|0.0   ;;  %vm169_vm0 = vmmov 0   ;;  %v170_v6 = vmov 0.0   ;;  %s222_s0 = inlined_call_operand.vmem [shape: f32[8,32], index: 0, kind: input, shape index: {}]   ;;  %s223_s1 = inlined_call_operand.vmem [shape: f32[32,128], index: 1, kind: input, shape index: {}]   ;;  %s224_s2 = inlined_call_operand.vmem [shape: f32[1,128], index: 2, kind: input, shape index: {}]   ;;  %s225_s3 = inlined_call_operand.hbm [shape: f32[8,128], index: 3, kind: output, shape index: {}]  }
   0x1   :  { %v16_v0 = vld [vmem:[%s223_s1] sm:$0xff]  ;;  %v17_v1 = vld [vmem:[%s223_s1 + $0x8] sm:$0xff]  ;;  %v18_v2 = vld [vmem:[%s223_s1 + $0x10] sm:$0xff]  ;;  %134 = vmatprep.subr.bf16.mxu0 %v168_v3  ;;  %131 = vmatprep.mubr.msk.f32.mxu0 %vm169_vm0, %v170_v6 }
   0x2   :  { %v135_v4 = vpack.c.bf16 %v17_v1, %v16_v0  ;;  %v19_v5 = vld [vmem:[%s223_s1 + $0x18] sm:$0xff] }
   0x3   :  { %8 = vsyncpa [#allocation3], 0  ;;  %v138_v7 = vpack.c.bf16 %v19_v5, %v18_v2  ;;  %v15_v8 = vld [vmem:[%s222_s0] sm:$0xff]  ;;  %vm27_vm1 = vcmask 261120   ;;  %s171_s24 = smov [#allocation2]  }
   0x4   :  { %136 = vmatpush3.bf16.msra.mxu0 %v135_v4  ;;  %v116_v9 = vld [vmem:[%s224_s2] ss:$0 sm:$0xff]  ;;  %s108_s1 = sshll.u32 %s171_s24, 4  ;;  %s109_s1 = int_to_ptr.vmem [resolvable:$true] %s108_s1 }
   0x5   :  { %137 = vmatprep.subr.bf16.mxu0 %v168_v3  ;;  %s144_s25 = scalar_lea.vmem %s109_s1, 128  ;;  %p149_p1 = scmp.lt.s32.totalorder %s109_s1, %s109_s1 }
   0x6   :  { %p145_p0 = scmp.ne.s32.totalorder %s109_s1, %s144_s25  ;;  %p150_p2 = scmp.lt.s32.totalorder %s144_s25, %s144_s25 }
   0x8   :  { %139 = vmatpush3.bf16.msra.mxu0 %v138_v7  ;;  %p151_p3 = por %p150_p2, %p149_p1 }
   0xa   :  { %p152_p4 = pnand %p151_p3, %p145_p0 }
   0xb   :  { %132 = vmatmul.mubr.msk.f32.vlgmr.msra.gmra.mrb[0].mxu0 %vm27_vm1, %v15_v8 }
  0xde   :  { %v97_v10 = vpop.f32.mrb[0].mxu0 }
  0xdf   :  { %v98_v11 = vadd.f32 %v116_v9, %v97_v10  ;;  %v133_v12 = vpop.f32.mrb[1].mxu0 }
  0xe1   :  { %101 = vst [vmem:[#allocation2] sm:$0xff] %v98_v11 }
  0xe2   :  { %155 = shalt.err (!%p152_p4)
}
  0xe3   :  { %s156_s27 = scalar_lea.hbm %s225_s3, 128 }
  0xe4   :  { %p157_p5 = scmp.ne.s32.totalorder %s225_s3, %s156_s27  ;;  %p160_p6 = scmp.lt.u32.totalorder %s156_s27, %s225_s3 }
  0xe6   :  { %p162_p7 = pnand %p160_p6, %p157_p5 }
  0xe8   :  { %165 = shalt.err (!%p162_p7)
}
  0xe9   :  { %111 = dma.vmem_to_hbm [thread:$0]  %s109_s1, 128, %s225_s3, [#allocation3]  }
  0xea   :  { %166 = dma.done.wait [#allocation3], 128  }
  0xeb   :  { %167 = vsyncadd [#allocation3], 4294967168 }
  0xec   :  { %115 = vsyncpa [#allocation3], 1 }

</bundles_post_ra>
